<compile_context>
chip_gen: v7x
topology: tpu7x:2x2x1
jax: 0.10.0
libtpu: 0.0.40
codegen_flags: <defaults>
</compile_context>

<pallas_src>
import jax
import jax.numpy as jnp
from jax.experimental import pallas as pl
from jax.experimental.pallas import tpu as pltpu

STATE_SIZE = 24      # BipedalWalker-v3 observation dim
ACTION_SIZE = 8
H1, H2 = 512, 256
OUT_PAD = 128        # lane-dense padded output width (>= ACTION_SIZE)
BATCH_TILE = 1024    # batch tile per grid step (multiple of 8)


def qnetwork_kernel(x_ref, w1_ref, b1_ref, w2_ref, b2_ref, w3_ref, b3_ref, o_ref):
    # fc1 + ReLU  (bf16 operands, f32 MXU accumulation)
    x = x_ref[...].astype(jnp.bfloat16)
    h1 = jnp.dot(x, w1_ref[...], preferred_element_type=jnp.float32)
    h1 = jnp.maximum(h1 + b1_ref[...], 0.0)
    # fc2 + ReLU
    h2 = jnp.dot(h1.astype(jnp.bfloat16), w2_ref[...],
                 preferred_element_type=jnp.float32)
    h2 = jnp.maximum(h2 + b2_ref[...], 0.0)
    # fc3 (no activation); lane-dense (tb, 128) block, stored in bf16
    out = jnp.dot(h2.astype(jnp.bfloat16), w3_ref[...],
                  preferred_element_type=jnp.float32)
    o_ref[...] = (out + b3_ref[...]).astype(o_ref.dtype)


def _round_up(n, m):
    return ((n + m - 1) // m) * m


def _forward_padded(x_padded, params, tb):
    """x_padded: (pad_b, STATE_SIZE) f32 with pad_b % tb == 0."""
    w1, b1, w2, b2, w3p, b3p = params
    pad_b = x_padded.shape[0]

    resident = lambda i: (0, 0)   # weights/biases: same block every grid step

    def res_spec(shape):
        # Constant block index -> keep a single VMEM copy (no double buffer).
        return pl.BlockSpec(shape, resident, pipeline_mode=pl.Buffered(1))

    return pl.pallas_call(
        qnetwork_kernel,
        out_shape=jax.ShapeDtypeStruct((pad_b, OUT_PAD), jnp.bfloat16),
        grid_spec=pltpu.PrefetchScalarGridSpec(
            num_scalar_prefetch=0,
            grid=(pad_b // tb,),
            in_specs=[
                pl.BlockSpec((tb, STATE_SIZE), lambda i: (i, 0)),  # x streams
                res_spec((STATE_SIZE, H1)),                        # w1 (bf16)
                res_spec((1, H1)),                                 # b1 (f32)
                res_spec((H1, H2)),                                # w2 (bf16)
                res_spec((1, H2)),                                 # b2 (f32)
                res_spec((H2, OUT_PAD)),                           # w3 padded (bf16)
                res_spec((1, OUT_PAD)),                            # b3 padded (f32)
            ],
            out_specs=pl.BlockSpec((tb, OUT_PAD), lambda i: (i, 0)),
        ),
        compiler_params=pltpu.CompilerParams(
            # v7x: batch axis sharded across the 2 TensorCores when grid >= 2.
            dimension_semantics=("parallel",),
        ),
    )(x_padded, w1, b1, w2, b2, w3p, b3p)


def qnetwork_forward(x, params):
    """x: (batch, STATE_SIZE) f32. Returns (batch, ACTION_SIZE) f32."""
    batch = x.shape[0]
    if batch <= BATCH_TILE:
        # Small-batch fast path (action selection): single grid step, pad only
        # to the next multiple of 8 sublanes.
        tb = max(8, _round_up(batch, 8))
    else:
        tb = BATCH_TILE
    pad_b = _round_up(batch, tb)
    if pad_b != batch:
        x = jnp.pad(x, ((0, pad_b - batch), (0, 0)))
    out = _forward_padded(x, params, tb)
    # TODO(synk): in a real training loop, fuse this pad/slice/cast into the
    # surrounding jit instead of paying separate XLA ops per call.
    return out[:batch, :ACTION_SIZE].astype(jnp.float32)


def init_params(key):
    """Mirrors PyTorch nn.Linear default init (U[-1/sqrt(fan_in), 1/sqrt(fan_in)]).

    Weights stored transposed (in, out) so each layer is y = x @ W + b, cast to
    bf16; fc3 weight/bias zero-padded to OUT_PAD columns so the final store is
    lane-dense.  Biases kept in f32.
    """
    def linear(key, fan_in, fan_out):
        kw, kb = jax.random.split(key)
        bound = 1.0 / jnp.sqrt(jnp.float32(fan_in))
        w = jax.random.uniform(kw, (fan_in, fan_out), jnp.float32, -bound, bound)
        b = jax.random.uniform(kb, (1, fan_out), jnp.float32, -bound, bound)
        return w, b

    k1, k2, k3 = jax.random.split(key, 3)
    w1, b1 = linear(k1, STATE_SIZE, H1)
    w2, b2 = linear(k2, H1, H2)
    w3, b3 = linear(k3, H2, ACTION_SIZE)

    w3p = jnp.zeros((H2, OUT_PAD), jnp.float32).at[:, :ACTION_SIZE].set(w3)
    b3p = jnp.zeros((1, OUT_PAD), jnp.float32).at[:, :ACTION_SIZE].set(b3)

    return (w1.astype(jnp.bfloat16), b1,
            w2.astype(jnp.bfloat16), b2,
            w3p.astype(jnp.bfloat16), b3p)


def qnetwork_ref(x, params):
    """Pure-JAX reference using the same (bf16-rounded) weights, f32 math."""
    w1, b1, w2, b2, w3p, b3p = params
    w1 = w1.astype(jnp.float32)
    w2 = w2.astype(jnp.float32)
    w3 = w3p.astype(jnp.float32)[:, :ACTION_SIZE]
    b3 = b3p[:, :ACTION_SIZE]
    h1 = jnp.maximum(x @ w1 + b1, 0.0)
    h2 = jnp.maximum(h1 @ w2 + b2, 0.0)
    return h2 @ w3 + b3


if __name__ == "__main__":
    key = jax.random.PRNGKey(0)
    k_x, k_p = jax.random.split(key)

    params = init_params(k_p)

    # Small per-step batch (action-selection regime -> fast path, grid=(1,)).
    batch = 8
    x = jax.random.normal(k_x, (batch, STATE_SIZE), jnp.float32)
    out = jax.block_until_ready(qnetwork_forward(x, params))
    ref = qnetwork_ref(x, params)
    assert out.shape == (batch, ACTION_SIZE)
    assert jnp.allclose(out, ref, atol=2e-2, rtol=2e-2), \
        float(jnp.max(jnp.abs(out - ref)))

    # Replay-buffer-style batch exercising the multi-tile grid + padding path.
    batch2 = 2 * BATCH_TILE + 40   # non-multiple of the tile -> tests padding
    x2 = jax.random.normal(k_x, (batch2, STATE_SIZE), jnp.float32)
    out2 = jax.block_until_ready(qnetwork_forward(x2, params))
    ref2 = qnetwork_ref(x2, params)
    assert out2.shape == (batch2, ACTION_SIZE)
    assert jnp.allclose(out2, ref2, atol=2e-2, rtol=2e-2), \
        float(jnp.max(jnp.abs(out2 - ref2)))

    print("KERNEL_OK")
</pallas_src>

<mosaic_0001>
module attributes {stable_mosaic.version = 11 : i64} {
  func.func @qnetwork_kernel(%arg0: i32, %arg1: memref<8x24xf32, #tpu.memory_space<vmem>>, %arg2: memref<24x512xbf16, #tpu.memory_space<vmem>>, %arg3: memref<1x512xf32, #tpu.memory_space<vmem>>, %arg4: memref<512x256xbf16, #tpu.memory_space<vmem>>, %arg5: memref<1x256xf32, #tpu.memory_space<vmem>>, %arg6: memref<256x128xbf16, #tpu.memory_space<vmem>>, %arg7: memref<1x128xf32, #tpu.memory_space<vmem>>, %arg8: memref<8x128xbf16, #tpu.memory_space<vmem>>) attributes {dimension_semantics = [#tpu.dimension_semantics<parallel>], iteration_bounds = array<i64: 1>, scalar_prefetch = 0 : i64, scratch_operands = 0 : i64, tpu.core_type = #tpu.core_type<tc>, window_params = [{transform_indices = @transform_0, window_bounds = array<i64: 8, 24>}, {pipeline_mode = #tpu.pipeline_mode<synchronous>, transform_indices = @transform_1, window_bounds = array<i64: 24, 512>}, {pipeline_mode = #tpu.pipeline_mode<synchronous>, transform_indices = @transform_2, window_bounds = array<i64: 1, 512>}, {pipeline_mode = #tpu.pipeline_mode<synchronous>, transform_indices = @transform_3, window_bounds = array<i64: 512, 256>}, {pipeline_mode = #tpu.pipeline_mode<synchronous>, transform_indices = @transform_4, window_bounds = array<i64: 1, 256>}, {pipeline_mode = #tpu.pipeline_mode<synchronous>, transform_indices = @transform_5, window_bounds = array<i64: 256, 128>}, {pipeline_mode = #tpu.pipeline_mode<synchronous>, transform_indices = @transform_6, window_bounds = array<i64: 1, 128>}, {transform_indices = @transform_7, window_bounds = array<i64: 8, 128>}]} {
    %c0 = arith.constant 0 : index
    %c0_0 = arith.constant 0 : index
    %0 = vector.load %arg1[%c0, %c0_0] : memref<8x24xf32, #tpu.memory_space<vmem>>, vector<8x24xf32>
    %1 = arith.truncf %0 : vector<8x24xf32> to vector<8x24xbf16>
    %c0_1 = arith.constant 0 : index
    %c0_2 = arith.constant 0 : index
    %2 = vector.load %arg2[%c0_1, %c0_2] : memref<24x512xbf16, #tpu.memory_space<vmem>>, vector<24x512xbf16>
    %cst = arith.constant dense<0.000000e+00> : vector<8x512xf32>
    %3 = tpu.matmul %1, %2, %cst {dimension_numbers = #tpu.dot_dimension_numbers<[1], [0], [0], [1], [0, 0, 1, 1], [], []>} : vector<8x24xbf16>, vector<24x512xbf16>, vector<8x512xf32> -> vector<8x512xf32>
    %c0_3 = arith.constant 0 : index
    %c0_4 = arith.constant 0 : index
    %4 = vector.load %arg3[%c0_3, %c0_4] : memref<1x512xf32, #tpu.memory_space<vmem>>, vector<1x512xf32>
    %5 = vector.broadcast %4 : vector<1x512xf32> to vector<8x512xf32>
    %6 = arith.addf %3, %5 : vector<8x512xf32>
    %cst_5 = arith.constant 0.000000e+00 : f32
    %7 = vector.broadcast %cst_5 : f32 to vector<8x512xf32>
    %8 = arith.maximumf %6, %7 : vector<8x512xf32>
    %9 = arith.truncf %8 : vector<8x512xf32> to vector<8x512xbf16>
    %c0_6 = arith.constant 0 : index
    %c0_7 = arith.constant 0 : index
    %10 = vector.load %arg4[%c0_6, %c0_7] : memref<512x256xbf16, #tpu.memory_space<vmem>>, vector<512x256xbf16>
    %cst_8 = arith.constant dense<0.000000e+00> : vector<8x256xf32>
    %11 = tpu.matmul %9, %10, %cst_8 {dimension_numbers = #tpu.dot_dimension_numbers<[1], [0], [0], [1], [0, 0, 1, 1], [], []>} : vector<8x512xbf16>, vector<512x256xbf16>, vector<8x256xf32> -> vector<8x256xf32>
    %c0_9 = arith.constant 0 : index
    %c0_10 = arith.constant 0 : index
    %12 = vector.load %arg5[%c0_9, %c0_10] : memref<1x256xf32, #tpu.memory_space<vmem>>, vector<1x256xf32>
    %13 = vector.broadcast %12 : vector<1x256xf32> to vector<8x256xf32>
    %14 = arith.addf %11, %13 : vector<8x256xf32>
    %cst_11 = arith.constant 0.000000e+00 : f32
    %15 = vector.broadcast %cst_11 : f32 to vector<8x256xf32>
    %16 = arith.maximumf %14, %15 : vector<8x256xf32>
    %17 = arith.truncf %16 : vector<8x256xf32> to vector<8x256xbf16>
    %c0_12 = arith.constant 0 : index
    %c0_13 = arith.constant 0 : index
    %18 = vector.load %arg6[%c0_12, %c0_13] : memref<256x128xbf16, #tpu.memory_space<vmem>>, vector<256x128xbf16>
    %cst_14 = arith.constant dense<0.000000e+00> : vector<8x128xf32>
    %19 = tpu.matmul %17, %18, %cst_14 {dimension_numbers = #tpu.dot_dimension_numbers<[1], [0], [0], [1], [0, 0, 1, 1], [], []>} : vector<8x256xbf16>, vector<256x128xbf16>, vector<8x128xf32> -> vector<8x128xf32>
    %c0_15 = arith.constant 0 : index
    %c0_16 = arith.constant 0 : index
    %20 = vector.load %arg7[%c0_15, %c0_16] : memref<1x128xf32, #tpu.memory_space<vmem>>, vector<1x128xf32>
    %21 = vector.broadcast %20 : vector<1x128xf32> to vector<8x128xf32>
    %22 = arith.addf %19, %21 : vector<8x128xf32>
    %23 = arith.truncf %22 : vector<8x128xf32> to vector<8x128xbf16>
    %c0_17 = arith.constant 0 : index
    %c0_18 = arith.constant 0 : index
    %24 = vector.load %arg8[%c0_17, %c0_18] : memref<8x128xbf16, #tpu.memory_space<vmem>>, vector<8x128xbf16>
    tpu.vector_store %arg8[%c0_17, %c0_18], %23 {strides = array<i32>} : memref<8x128xbf16, #tpu.memory_space<vmem>>, vector<8x128xbf16>,
    return
  }
  func.func @transform_0(%arg0: i32) -> (i32, i32) {
    %c0_i32 = arith.constant 0 : i32
    %c0_i32_0 = arith.constant 0 : i32
    return %arg0, %c0_i32 : i32, i32
  }
  func.func @transform_1(%arg0: i32) -> (i32, i32) {
    %c0_i32 = arith.constant 0 : i32
    %c0_i32_0 = arith.constant 0 : i32
    %c0_i32_1 = arith.constant 0 : i32
    return %c0_i32, %c0_i32_0 : i32, i32
  }
  func.func @transform_2(%arg0: i32) -> (i32, i32) {
    %c0_i32 = arith.constant 0 : i32
    %c0_i32_0 = arith.constant 0 : i32
    %c0_i32_1 = arith.constant 0 : i32
    return %c0_i32, %c0_i32_0 : i32, i32
  }
  func.func @transform_3(%arg0: i32) -> (i32, i32) {
    %c0_i32 = arith.constant 0 : i32
    %c0_i32_0 = arith.constant 0 : i32
    %c0_i32_1 = arith.constant 0 : i32
    return %c0_i32, %c0_i32_0 : i32, i32
  }
  func.func @transform_4(%arg0: i32) -> (i32, i32) {
    %c0_i32 = arith.constant 0 : i32
    %c0_i32_0 = arith.constant 0 : i32
    %c0_i32_1 = arith.constant 0 : i32
    return %c0_i32, %c0_i32_0 : i32, i32
  }
  func.func @transform_5(%arg0: i32) -> (i32, i32) {
    %c0_i32 = arith.constant 0 : i32
    %c0_i32_0 = arith.constant 0 : i32
    %c0_i32_1 = arith.constant 0 : i32
    return %c0_i32, %c0_i32_0 : i32, i32
  }
  func.func @transform_6(%arg0: i32) -> (i32, i32) {
    %c0_i32 = arith.constant 0 : i32
    %c0_i32_0 = arith.constant 0 : i32
    %c0_i32_1 = arith.constant 0 : i32
    return %c0_i32, %c0_i32_0 : i32, i32
  }
  func.func @transform_7(%arg0: i32) -> (i32, i32) {
    %c0_i32 = arith.constant 0 : i32
    %c0_i32_0 = arith.constant 0 : i32
    return %arg0, %c0_i32 : i32, i32
  }
}

</mosaic_0001>

<bundles_post_ra>
// kernel: tpu_custom_call.1
= control target key start
LH: loop header
LB: loop body
LE: loop exit
PB: predicated region body
PF: predicated region fallthrough
CT: control target
= control target key end

     0   :  { %12 = vsyncpa [#allocation3], 0  ;;  %s1436_s0 = inlined_call_operand.hbm [shape: f32[8,24], index: 0, kind: input, shape index: {}]   ;;  %s1437_s1 = inlined_call_operand.hbm [shape: bf16[24,512], index: 1, kind: input, shape index: {}]   ;;  %s1438_s2 = inlined_call_operand.vmem [shape: f32[1,512], index: 2, kind: input, shape index: {}]   ;;  %s1439_s3 = inlined_call_operand.hbm [shape: bf16[512,256], index: 3, kind: input, shape index: {}]   ;;  %s1440_s4 = inlined_call_operand.vmem [shape: f32[1,256], index: 4, kind: input, shape index: {}]   ;;  %s1441_s5 = inlined_call_operand.hbm [shape: bf16[256,128], index: 5, kind: input, shape index: {}]   ;;  %s1442_s6 = inlined_call_operand.vmem [shape: f32[1,128], index: 6, kind: input, shape index: {}]   ;;  %s1443_s7 = inlined_call_operand.hbm [shape: bf16[8,128], index: 7, kind: output, shape index: {}]  }
   0x1   :  { %13 = vsyncpa [#allocation6], 0 }
   0x2   :  { %14 = vsyncpa [#allocation9], 0 }
   0x3   :  { %15 = vsyncpa [#allocation4], 0  ;;  %s1295_s24 = smov [#allocation5]   ;;  %s1177_s28 = scalar_lea.hbm %s1437_s1, 768 }
   0x4   :  { %s31_s25 = sshll.u32 %s1295_s24, 4  ;;  %p1178_p0 = scmp.ne.s32.totalorder %s1437_s1, %s1177_s28  ;;  %s32_s25 = int_to_ptr.vmem [resolvable:$true] %s31_s25 }
   0x5   :  { %p1181_p1 = scmp.lt.u32.totalorder %s1177_s28, %s1437_s1 }
   0x7   :  { %p1183_p2 = pnand %p1181_p1, %p1178_p0 }
   0x9   :  { %1186 = shalt.err (!%p1183_p2)
}
   0xa   :  { %s1187_s10 = scalar_lea.vmem %s32_s25, 768  ;;  %p1192_p4 = scmp.lt.s32.totalorder %s32_s25, %s32_s25 }
   0xb   :  { %p1188_p3 = scmp.ne.s32.totalorder %s32_s25, %s1187_s10  ;;  %p1193_p5 = scmp.lt.s32.totalorder %s1187_s10, %s1187_s10 }
   0xd   :  { %p1194_p6 = por %p1193_p5, %p1192_p4 }
   0xf   :  { %p1195_p7 = pnand %p1194_p6, %p1188_p3 }
  0x11   :  { %1198 = shalt.err (!%p1195_p7)
}
  0x12   :  { %s1296_s11 = smov 256   ;;  %s1297_s12 = smov 16  }
  0x13   :  { %37 = dma.hbm_to_vmem [thread:$0]  %s1437_s1, 768, %s32_s25, [#allocation6], %s1296_s11, %s1296_s11, %s1297_s12  }
  0x14   :  { %s1298_s15 = smov [#allocation2]   ;;  %s1299_s17 = smov [#allocation7]  }
  0x15   :  { %s22_s16 = sshll.u32 %s1298_s15, 4  ;;  %s45_s18 = sshll.u32 %s1299_s17, 4  ;;  %s23_s16 = int_to_ptr.vmem [resolvable:$true] %s22_s16  ;;  %s46_s18 = int_to_ptr.vmem [resolvable:$true] %s45_s18 }
  0x16   :  { %s1199_s21 = scalar_lea.hbm %s1436_s0, 128 }
  0x17   :  { %p1200_p8 = scmp.ne.s32.totalorder %s1436_s0, %s1199_s21  ;;  %p1203_p9 = scmp.lt.u32.totalorder %s1199_s21, %s1436_s0 }
  0x19   :  { %p1205_p10 = pnand %p1203_p9, %p1200_p8 }
  0x1b   :  { %1208 = shalt.err (!%p1205_p10)
}
  0x1c   :  { %s1209_s1 = scalar_lea.vmem %s23_s16, 128  ;;  %p1214_p12 = scmp.lt.s32.totalorder %s23_s16, %s23_s16 }
  0x1d   :  { %p1210_p11 = scmp.ne.s32.totalorder %s23_s16, %s1209_s1  ;;  %p1215_p13 = scmp.lt.s32.totalorder %s1209_s1, %s1209_s1 }
  0x1f   :  { %p1216_p0 = por %p1215_p13, %p1214_p12 }
  0x21   :  { %p1217_p1 = pnand %p1216_p0, %p1210_p11 }
  0x23   :  { %1220 = shalt.err (!%p1217_p1)
}
  0x24   :  { %25 = dma.hbm_to_vmem [thread:$0]  %s1436_s0, 128, %s23_s16, [#allocation3]  }
  0x25   :  { %s1221_s30 = scalar_lea.hbm %s1439_s3, 8192 }
  0x26   :  { %p1222_p2 = scmp.ne.s32.totalorder %s1439_s3, %s1221_s30  ;;  %p1225_p3 = scmp.lt.u32.totalorder %s1221_s30, %s1439_s3 }
  0x28   :  { %p1227_p4 = pnand %p1225_p3, %p1222_p2 }
  0x2a   :  { %1230 = shalt.err (!%p1227_p4)
}
  0x2b   :  { %s1231_s12 = scalar_lea.vmem %s46_s18, 8192  ;;  %p1236_p6 = scmp.lt.s32.totalorder %s46_s18, %s46_s18 }
  0x2c   :  { %p1232_p5 = scmp.ne.s32.totalorder %s46_s18, %s1231_s12  ;;  %p1237_p7 = scmp.lt.s32.totalorder %s1231_s12, %s1231_s12 }
  0x2e   :  { %p1238_p8 = por %p1237_p7, %p1236_p6 }
  0x30   :  { %p1239_p9 = pnand %p1238_p8, %p1232_p5 }
  0x32   :  { %1242 = shalt.err (!%p1239_p9)
}
  0x33   :  { %s1300_s0 = smov 128   ;;  %s1301_s13 = smov 8  }
  0x34   :  { %51 = dma.hbm_to_vmem [thread:$0]  %s1439_s3, 8192, %s46_s18, [#allocation6], %s1300_s0, %s1300_s0, %s1301_s13  }
  0x35   :  { %s1302_s16 = smov [#allocation8]   ;;  %s1243_s21 = scalar_lea.hbm %s1441_s5, 2048 }
  0x36   :  { %s59_s17 = sshll.u32 %s1302_s16, 4  ;;  %p1244_p10 = scmp.ne.s32.totalorder %s1441_s5, %s1243_s21  ;;  %s60_s17 = int_to_ptr.vmem [resolvable:$true] %s59_s17 }
  0x37   :  { %p1247_p11 = scmp.lt.u32.totalorder %s1243_s21, %s1441_s5 }
  0x39   :  { %p1249_p12 = pnand %p1247_p11, %p1244_p10 }
  0x3b   :  { %1252 = shalt.err (!%p1249_p12)
}
  0x3c   :  { %s1253_s1 = scalar_lea.vmem %s60_s17, 2048  ;;  %p1258_p0 = scmp.lt.s32.totalorder %s60_s17, %s60_s17 }
  0x3d   :  { %p1254_p13 = scmp.ne.s32.totalorder %s60_s17, %s1253_s1  ;;  %p1259_p1 = scmp.lt.s32.totalorder %s1253_s1, %s1253_s1 }
  0x3f   :  { %p1260_p2 = por %p1259_p1, %p1258_p0 }
  0x41   :  { %p1261_p3 = pnand %p1260_p2, %p1254_p13 }
  0x43   :  { %1264 = shalt.err (!%p1261_p3)
}
  0x44   :  { %s1303_s3 = smov 64   ;;  %s1304_s18 = smov 4  }
  0x45   :  { %65 = dma.hbm_to_vmem [thread:$0]  %s1441_s5, 2048, %s60_s17, [#allocation9], %s1303_s3, %s1303_s3, %s1304_s18  }
  0x46   :  { %1287 = dma.done.wait [#allocation3], 128  }
  0x47   :  { %1288 = vsyncadd [#allocation3], 4294967168 }
  0x48   :  { %1289 = dma.done.wait [#allocation6], 8960  }
  0x49   :  { %1290 = vsyncadd [#allocation6], 4294958336 }
  0x4a   :  { %1291 = dma.done.wait [#allocation9], 2048  }
  0x4b   :  { %1292 = vsyncadd [#allocation9], 4294965248  ;;  %v1305_v0 = vmov 0   ;;  %v1055_v1 = vld [vmem:[#allocation5 + $0x4] ss:$16 sps:$4 sm:$0xff]   ;;  %vm145_vm0 = vcmask 1043456  }
  0x4c   :  { %190 = vmatprep.mubr.bf16.mxu0 %v1305_v0  ;;  %v1057_v2 = vld [vmem:[#allocation5] ss:$16 sps:$4 sm:$0xff]   ;;  %158 = vmatprep.subr.bf16.mxu0 %v1055_v1  ;;  %v81_v6 = vld [vmem:[#allocation2] sm:$0xff]  ;;  %v88_v8 = vld [vmem:[#allocation5 + $0x28] sm:$0xff]  ;;  %vm141_vm1 = vcmask 195584   ;;  %s1306_s8 = smov [#allocation10]  }
  0x4d   :  { %v87_v3 = vld [vmem:[#allocation5 + $0x20] sm:$0xff]  ;;  %159 = vmatpush1.bf16.msra.mxu0 %v1057_v2  ;;  %v1062_v7 = vld [vmem:[#allocation5 + $0xc] ss:$16 sps:$4 sm:$0xff]   ;;  %v1067_v11 = vld [vmem:[#allocation7] ss:$8 sps:$4 sm:$0xff]   ;;  %v82_v13 = vpack.c.bf16 %v81_v6, %v81_v6  ;;  %v931_v15 = vcombine.high %v88_v8, %v88_v8  ;;  %v930_v16 = vcombine.low %v88_v8, %v88_v8  ;;  %s913_s9 = sshll.u32 %s1306_s8, 4  ;;  %s914_s9 = int_to_ptr.vmem [resolvable:$true] %s913_s9 }
  0x4e   :  { %v929_v4 = vcombine.high %v87_v3, %v87_v3  ;;  %v928_v5 = vcombine.low %v87_v3, %v87_v3  ;;  %v1065_v10 = vld [vmem:[#allocation7 + $0x4] ss:$8 sps:$4 sm:$0xff]   ;;  %v1068_v12 = vld [vmem:[#allocation7 + $0x14] ss:$8 sps:$4 sm:$0xff]   ;;  %v1060_v14 = vld [vmem:[#allocation5 + $0x8] ss:$16 sps:$4 sm:$0xff]   ;;  %p1270_p5 = scmp.lt.s32.totalorder %s914_s9, %s914_s9 }
  0x4f   :  { %644 = vmatprep.subr.bf16.mxu1 %v1065_v10  ;;  %v1070_v17 = vld [vmem:[#allocation7 + $0x10] ss:$8 sps:$4 sm:$0xff]   ;;  %v1071_v18 = vld [vmem:[#allocation7 + $0x24] ss:$8 sps:$4 sm:$0xff]   ;;  %v153_v20 = vsel %vm145_vm0, %v930_v16, 0  ;;  %v91_v16 = vlaneseq  ;;  %s1265_s10 = scalar_lea.vmem %s914_s9, 64 }
  0x50   :  { %932 = vmatprep.subr.msk.bf16.mxu0 %vm145_vm0, %v929_v4  ;;  %v147_v9 = vsel %vm145_vm0, %v928_v5, 0  ;;  %645 = vmatpush1.bf16.msra.mxu1 %v1067_v11  ;;  %v1075_v19 = vld [vmem:[#allocation7 + $0x104] ss:$8 sps:$4 sm:$0xff]   ;;  %v1076_v21 = vld [vmem:[#allocation7 + $0x20] ss:$8 sps:$4 sm:$0xff]   ;;  %p1266_p4 = scmp.ne.s32.totalorder %s914_s9, %s1265_s10  ;;  %p1271_p6 = scmp.lt.s32.totalorder %s1265_s10, %s1265_s10 }
  0x51   :  { %161 = vmatpush1.bf16.msra.mxu0 %v147_v9  ;;  %646 = vmatprep.subr.bf16.mxu1 %v1068_v12  ;;  %v1077_v22 = vld [vmem:[#allocation7 + $0x34] ss:$8 sps:$4 sm:$0xff]   ;;  %v1073_v23 = vld [vmem:[#allocation7 + $0x100] ss:$8 sps:$4 sm:$0xff]   ;;  %v1082_v25 = vld [vmem:[#allocation7 + $0x30] ss:$8 sps:$4 sm:$0xff]  }
  0x52   :  { %199 = vmatprep.subr.bf16.mxu0 %v1062_v7  ;;  %v1081_v24 = vld [vmem:[#allocation7 + $0x114] ss:$8 sps:$4 sm:$0xff]   ;;  %v1083_v26 = vld [vmem:[#allocation7 + $0x44] ss:$8 sps:$4 sm:$0xff]   ;;  %v1079_v27 = vld [vmem:[#allocation7 + $0x110] ss:$8 sps:$4 sm:$0xff]   ;;  %p1272_p7 = por %p1271_p6, %p1270_p5 }
  0x53   :  { %v1087_v28 = vld [vmem:[#allocation7 + $0x124] ss:$8 sps:$4 sm:$0xff]   ;;  %v1088_v29 = vld [vmem:[#allocation7 + $0x40] ss:$8 sps:$4 sm:$0xff]   ;;  %v1089_v30 = vld [vmem:[#allocation7 + $0x54] ss:$8 sps:$4 sm:$0xff]  }
  0x54   :  { %933 = vmatmul.mubr.msk.bf16.vlgmr.msra.gmra.mrb[0].mxu0 %vm141_vm1, %v82_v13  ;;  %647 = vmatpush1.bf16.msra.mxu1 %v1070_v17  ;;  %v1085_v31 = vld [vmem:[#allocation7 + $0x120] ss:$8 sps:$4 sm:$0xff]   ;;  %v1093_v32 = vld [vmem:[#allocation7 + $0x134] ss:$8 sps:$4 sm:$0xff]   ;;  %v1094_v33 = vld [vmem:[#allocation7 + $0x50] ss:$8 sps:$4 sm:$0xff]   ;;  %p1273_p8 = pnand %p1272_p7, %p1266_p4 }
  0x55   :  { %200 = vmatpush1.bf16.msra.mxu0 %v1060_v14  ;;  %231 = vmatprep.mubr.bf16.mxu0 %v1305_v0  ;;  %v1095_v34 = vld [vmem:[#allocation7 + $0x64] ss:$8 sps:$4 sm:$0xff]   ;;  %v1091_v35 = vld [vmem:[#allocation7 + $0x130] ss:$8 sps:$4 sm:$0xff]   ;;  %v1100_v37 = vld [vmem:[#allocation7 + $0x60] ss:$8 sps:$4 sm:$0xff]  }
  0x56   :  { %934 = vmatprep.subr.msk.bf16.mxu0 %vm145_vm0, %v931_v15  ;;  %648 = vmatprep.subr.bf16.mxu1 %v1071_v18  ;;  %v1099_v36 = vld [vmem:[#allocation7 + $0x144] ss:$8 sps:$4 sm:$0xff]   ;;  %v1101_v38 = vld [vmem:[#allocation7 + $0x74] ss:$8 sps:$4 sm:$0xff]   ;;  %v1097_v39 = vld [vmem:[#allocation7 + $0x140] ss:$8 sps:$4 sm:$0xff]  }
  0x57   :  { %v1105_v40 = vld [vmem:[#allocation7 + $0x154] ss:$8 sps:$4 sm:$0xff]   ;;  %v1106_v41 = vld [vmem:[#allocation7 + $0x70] ss:$8 sps:$4 sm:$0xff]   ;;  %v1107_v42 = vld [vmem:[#allocation7 + $0x84] ss:$8 sps:$4 sm:$0xff]  }
  0x58   :  { %649 = vmatpush1.bf16.msra.mxu1 %v1076_v21  ;;  %v1103_v43 = vld [vmem:[#allocation7 + $0x150] ss:$8 sps:$4 sm:$0xff]   ;;  %v1111_v44 = vld [vmem:[#allocation7 + $0x164] ss:$8 sps:$4 sm:$0xff]   ;;  %v1112_v45 = vld [vmem:[#allocation7 + $0x80] ss:$8 sps:$4 sm:$0xff]  }
  0x59   :  { %202 = vmatpush1.bf16.msra.mxu0 %v153_v20  ;;  %650 = vmatprep.subr.bf16.mxu1 %v1077_v22  ;;  %v1109_v46 = vld [vmem:[#allocation7 + $0x160] ss:$8 sps:$4 sm:$0xff]   ;;  %v1113_v47 = vld [vmem:[#allocation7 + $0x94] ss:$8 sps:$4 sm:$0xff]   ;;  %v1118_v49 = vld [vmem:[#allocation7 + $0x90] ss:$8 sps:$4 sm:$0xff]  }
  0x5a   :  { %685 = vmatprep.subr.bf16.mxu0 %v1075_v19  ;;  %v1117_v48 = vld [vmem:[#allocation7 + $0x174] ss:$8 sps:$4 sm:$0xff]   ;;  %v1119_v50 = vld [vmem:[#allocation7 + $0xa4] ss:$8 sps:$4 sm:$0xff]   ;;  %v1115_v51 = vld [vmem:[#allocation7 + $0x170] ss:$8 sps:$4 sm:$0xff]  }
  0x5b   :  { %v1123_v52 = vld [vmem:[#allocation7 + $0x184] ss:$8 sps:$4 sm:$0xff]   ;;  %v1124_v53 = vld [vmem:[#allocation7 + $0xa0] ss:$8 sps:$4 sm:$0xff]   ;;  %v1125_v54 = vld [vmem:[#allocation7 + $0xb4] ss:$8 sps:$4 sm:$0xff]  }
  0x5c   :  { %935 = vmatmul.mubr.msk.bf16.vlgmr.msra.gmra.mrb[4].mxu0 %vm141_vm1, %v82_v13  ;;  %651 = vmatpush1.bf16.msra.mxu1 %v1082_v25  ;;  %v1121_v55 = vld [vmem:[#allocation7 + $0x180] ss:$8 sps:$4 sm:$0xff]   ;;  %v1129_v56 = vld [vmem:[#allocation7 + $0x194] ss:$8 sps:$4 sm:$0xff]   ;;  %v1130_v57 = vld [vmem:[#allocation7 + $0xb0] ss:$8 sps:$4 sm:$0xff]  }
  0x5d   :  { %686 = vmatpush1.bf16.msra.mxu0 %v1073_v23  ;;  %652 = vmatprep.subr.bf16.mxu1 %v1083_v26  ;;  %v1131_v58 = vld [vmem:[#allocation7 + $0xc4] ss:$8 sps:$4 sm:$0xff]   ;;  %v1127_v59 = vld [vmem:[#allocation7 + $0x190] ss:$8 sps:$4 sm:$0xff]   ;;  %v1136_v61 = vld [vmem:[#allocation7 + $0xc0] ss:$8 sps:$4 sm:$0xff]  }
  0x5e   :  { %687 = vmatprep.subr.bf16.mxu0 %v1081_v24  ;;  %v1135_v60 = vld [vmem:[#allocation7 + $0x1a4] ss:$8 sps:$4 sm:$0xff]   ;;  %v1137_v62 = vld [vmem:[#allocation7 + $0xd4] ss:$8 sps:$4 sm:$0xff]   ;;  %v1133_v63 = vld [vmem:[#allocation7 + $0x1a0] ss:$8 sps:$4 sm:$0xff]  }
  0x5f   :  { %v1141_v0 = vld [vmem:[#allocation7 + $0x1b4] ss:$8 sps:$4 sm:$0xff]   ;;  %v1142_v1 = vld [vmem:[#allocation7 + $0xd0] ss:$8 sps:$4 sm:$0xff]   ;;  %v1143_v3 = vld [vmem:[#allocation7 + $0xe4] ss:$8 sps:$4 sm:$0xff]  }
  0x60   :  { %653 = vmatpush1.bf16.msra.mxu1 %v1088_v29  ;;  %v1139_v2 = vld [vmem:[#allocation7 + $0x1b0] ss:$8 sps:$4 sm:$0xff]   ;;  %v1147_v4 = vld [vmem:[#allocation7 + $0x1c4] ss:$8 sps:$4 sm:$0xff]   ;;  %v1145_v5 = vld [vmem:[#allocation7 + $0x1c0] ss:$8 sps:$4 sm:$0xff]  }
  0x61   :  { %688 = vmatpush1.bf16.msra.mxu0 %v1079_v27  ;;  %654 = vmatprep.subr.bf16.mxu1 %v1089_v30  ;;  %v1148_v6 = vld [vmem:[#allocation7 + $0xe0] ss:$8 sps:$4 sm:$0xff]   ;;  %v1149_v7 = vld [vmem:[#allocation7 + $0xf4] ss:$8 sps:$4 sm:$0xff]   ;;  %v1151_v9 = vld [vmem:[#allocation7 + $0x1d0] ss:$8 sps:$4 sm:$0xff]  }
  0x62   :  { %689 = vmatprep.subr.bf16.mxu0 %v1087_v28  ;;  %v1153_v8 = vld [vmem:[#allocation7 + $0x1d4] ss:$8 sps:$4 sm:$0xff]   ;;  %v1154_v10 = vld [vmem:[#allocation7 + $0xf0] ss:$8 sps:$4 sm:$0xff]   ;;  %v1157_v11 = vld [vmem:[#allocation7 + $0x1e4] ss:$8 sps:$4 sm:$0xff]  }
  0x63   :  { %v1155_v12 = vld [vmem:[#allocation7 + $0x1e0] ss:$8 sps:$4 sm:$0xff]   ;;  %v1160_v13 = vld [vmem:[#allocation7 + $0x1f4] ss:$8 sps:$4 sm:$0xff]   ;;  %v1158_v14 = vld [vmem:[#allocation7 + $0x1f0] ss:$8 sps:$4 sm:$0xff]  }
  0x64   :  { %655 = vmatpush1.bf16.msra.mxu1 %v1094_v33  ;;  %v1161_v15 = vld [vmem:[#allocation8 + $0x40] sm:$0xff]   ;;  %v1401_v17 = vshrl.u32 %v91_v16, 7  ;;  %v89_v19 = vld [vmem:[%s1438_s2] sm:$0xf] }
  0x65   :  { %690 = vmatpush1.bf16.msra.mxu0 %v1085_v31  ;;  %656 = vmatprep.subr.bf16.mxu1 %v1095_v34 }
  0x66   :  { %691 = vmatprep.subr.bf16.mxu0 %v1093_v32  ;;  %v93_v18 = vsub.s32 0, %v1401_v17  ;;  %v97_v20 = vsub.s32 1, %v1401_v17  ;;  %v101_v26 = vsub.s32 2, %v1401_v17  ;;  %v105_v29 = vsub.s32 3, %v1401_v17  ;;  %v1000_v17 = vld [vmem:[%s1442_s6] ss:$0 sm:$0xff] }
  0x68   :  { %657 = vmatpush1.bf16.msra.mxu1 %v1100_v37  ;;  %v94_v21 = vrot.slane %v89_v19, %v93_v18  ;;  %v98_v22 = vrot.slane %v89_v19, %v97_v20  ;;  %v102_v33 = vrot.slane %v89_v19, %v101_v26 }
  0x69   :  { %692 = vmatpush1.bf16.msra.mxu0 %v1091_v35  ;;  %658 = vmatprep.subr.bf16.mxu1 %v1101_v38  ;;  %v106_v35 = vrot.slane %v89_v19, %v105_v29  ;;  %v1163_v38 = vld [vmem:[#allocation8 + $0x48] sm:$0xff]  }
  0x6a   :  { %693 = vmatprep.subr.bf16.mxu0 %v1099_v36  ;;  %v1162_v36 = vld [vmem:[#allocation8] sm:$0xff]  }
  0x6c   :  { %659 = vmatpush1.bf16.msra.mxu1 %v1106_v41 }
  0x6d   :  { %694 = vmatpush1.bf16.msra.mxu0 %v1097_v39  ;;  %660 = vmatprep.subr.bf16.mxu1 %v1107_v42 }
  0x6e   :  { %695 = vmatprep.subr.bf16.mxu0 %v1105_v40 }
  0x70   :  { %661 = vmatpush1.bf16.msra.mxu1 %v1112_v45 }
  0x71   :  { %696 = vmatpush1.bf16.msra.mxu0 %v1103_v43  ;;  %662 = vmatprep.subr.bf16.mxu1 %v1113_v47  ;;  %v1165_v47 = vld [vmem:[#allocation8 + $0x50] sm:$0xff]  }
  0x72   :  { %697 = vmatprep.subr.bf16.mxu0 %v1111_v44  ;;  %v1164_v44 = vld [vmem:[#allocation8 + $0x8] sm:$0xff]  }
  0x74   :  { %663 = vmatpush1.bf16.msra.mxu1 %v1118_v49 }
  0x75   :  { %698 = vmatpush1.bf16.msra.mxu0 %v1109_v46  ;;  %664 = vmatprep.subr.bf16.mxu1 %v1119_v50  ;;  %v1166_v50 = vld [vmem:[#allocation8 + $0x10] sm:$0xff]  }
  0x76   :  { %699 = vmatprep.subr.bf16.mxu0 %v1117_v48 }
  0x78   :  { %665 = vmatpush1.bf16.msra.mxu1 %v1124_v53  ;;  %v1168_v53 = vld [vmem:[#allocation8 + $0x18] sm:$0xff]  }
  0x79   :  { %700 = vmatpush1.bf16.msra.mxu0 %v1115_v51  ;;  %666 = vmatprep.subr.bf16.mxu1 %v1125_v54  ;;  %v1169_v54 = vld [vmem:[#allocation8 + $0x60] sm:$0xff]  }
  0x7a   :  { %701 = vmatprep.subr.bf16.mxu0 %v1123_v52  ;;  %v1167_v52 = vld [vmem:[#allocation8 + $0x58] sm:$0xff]  }
  0x7c   :  { %667 = vmatpush1.bf16.msra.mxu1 %v1130_v57  ;;  %v1172_v57 = vld [vmem:[#allocation8 + $0x28] sm:$0xff]  }
  0x7d   :  { %702 = vmatpush1.bf16.msra.mxu0 %v1121_v55  ;;  %668 = vmatprep.subr.bf16.mxu1 %v1131_v58  ;;  %v1170_v55 = vld [vmem:[#allocation8 + $0x20] sm:$0xff]   ;;  %v1173_v58 = vld [vmem:[#allocation8 + $0x70] sm:$0xff]  }
  0x7e   :  { %703 = vmatprep.subr.bf16.mxu0 %v1129_v56  ;;  %v1171_v56 = vld [vmem:[#allocation8 + $0x68] sm:$0xff]  }
  0x80   :  { %669 = vmatpush1.bf16.msra.mxu1 %v1136_v61  ;;  %v1176_v61 = vld [vmem:[#allocation8 + $0x38] sm:$0xff]  }
  0x81   :  { %704 = vmatpush1.bf16.msra.mxu0 %v1127_v59  ;;  %670 = vmatprep.subr.bf16.mxu1 %v1137_v62  ;;  %v1174_v59 = vld [vmem:[#allocation8 + $0x30] sm:$0xff]   ;;  %v312_v62 = vld [vmem:[%s1440_s4] sm:$0x3] }
  0x82   :  { %705 = vmatprep.subr.bf16.mxu0 %v1135_v60  ;;  %v1175_v60 = vld [vmem:[#allocation8 + $0x78] sm:$0xff]  }
  0x84   :  { %671 = vmatpush1.bf16.msra.mxu1 %v1142_v1 }
  0x85   :  { %706 = vmatpush1.bf16.msra.mxu0 %v1133_v63  ;;  %672 = vmatprep.subr.bf16.mxu1 %v1143_v3 }
  0x86   :  { %707 = vmatprep.subr.bf16.mxu0 %v1141_v0 }
  0x88   :  { %673 = vmatpush1.bf16.msra.mxu1 %v1148_v6 }
  0x89   :  { %708 = vmatpush1.bf16.msra.mxu0 %v1139_v2  ;;  %674 = vmatprep.subr.bf16.mxu1 %v1149_v7  ;;  %v317_v2 = vrot.slane %v312_v62, %v93_v18 }
  0x8a   :  { %709 = vmatprep.subr.bf16.mxu0 %v1147_v4  ;;  %v321_v4 = vrot.slane %v312_v62, %v97_v20 }
  0x8c   :  { %675 = vmatpush1.bf16.msra.mxu1 %v1154_v10 }
  0x8d   :  { %710 = vmatpush1.bf16.msra.mxu0 %v1145_v5  ;;  %1017 = vmatprep.subr.bf16.mxu1 %v1161_v15 }
  0x8e   :  { %711 = vmatprep.subr.bf16.mxu0 %v1153_v8 }
  0x91   :  { %712 = vmatpush1.bf16.msra.mxu0 %v1151_v9 }
  0x92   :  { %713 = vmatprep.subr.bf16.mxu0 %v1157_v11 }
  0x95   :  { %714 = vmatpush1.bf16.msra.mxu0 %v1155_v12 }
  0x96   :  { %715 = vmatprep.subr.bf16.mxu0 %v1160_v13 }
  0x99   :  { %716 = vmatpush1.bf16.msra.mxu0 %v1158_v14 }
 0x127   :  { %v192_v23 = vpop.f32.mrb[0].mxu0 }
 0x128   :  { %v193_v24 = vadd.f32 %v192_v23, %v94_v21  ;;  %v194_v25 = vpop.f32.mrb[1].mxu0 }
 0x129   :  { %v195_v27 = vadd.f32 %v194_v25, %v98_v22  ;;  %v196_v28 = vpop.f32.mrb[2].mxu0 }
 0x12a   :  { %v240_v30 = vmax.f32 %v193_v24, 0.0  ;;  %v197_v31 = vpop.f32.mrb[3].mxu0 }
 0x12b   :  { %v241_v32 = vmax.f32 %v195_v27, 0.0 }
 0x12c   :  { %v244_v37 = vpack.c.bf16 %v240_v30, %v240_v30 }
 0x12d   :  { %v245_v34 = vpack.c.bf16 %v241_v32, %v241_v32 }
 0x12f   :  { %v233_v39 = vpop.f32.mrb[4].mxu0  ;;  %676 = vmatprep.mubr.bf16.mxu1 %v245_v34 }
 0x130   :  { %v234_v40 = vadd.f32 %v233_v39, %v102_v33  ;;  %v235_v41 = vpop.f32.mrb[5].mxu0  ;;  %677 = vmatmul.mubr.bf16.vlgmr.msra.gmra.mrb[0].mxu1 %v244_v37 }
 0x131   :  { %v236_v42 = vadd.f32 %v235_v41, %v106_v35  ;;  %v237_v43 = vpop.f32.mrb[6].mxu0  ;;  %1018 = vmatpush3.bf16.msra.mxu1 %v1162_v36 }
 0x132   :  { %v242_v45 = vmax.f32 %v234_v40, 0.0  ;;  %v238_v46 = vpop.f32.mrb[7].mxu0  ;;  %1019 = vmatprep.subr.bf16.mxu1 %v1163_v38 }
 0x133   :  { %v243_v48 = vmax.f32 %v236_v42, 0.0 }
 0x134   :  { %v246_v51 = vpack.c.bf16 %v242_v45, %v242_v45 }
 0x135   :  { %v247_v49 = vpack.c.bf16 %v243_v48, %v243_v48  ;;  %1020 = vmatpush3.bf16.msra.mxu1 %v1164_v44 }
 0x136   :  { %1021 = vmatprep.subr.bf16.mxu1 %v1165_v47 }
 0x137   :  { %717 = vmatprep.mubr.bf16.mxu0 %v247_v49 }
 0x138   :  { %718 = vmatmul.mubr.bf16.vlgmr.msra.gmra.mrb[8].mxu0 %v246_v51 }
 0x139   :  { %1022 = vmatpush3.bf16.msra.mxu1 %v1166_v50 }
 0x13a   :  { %1023 = vmatprep.subr.bf16.mxu1 %v1167_v52 }
 0x13d   :  { %1024 = vmatpush3.bf16.msra.mxu1 %v1168_v53 }
 0x13e   :  { %1025 = vmatprep.subr.bf16.mxu1 %v1169_v54 }
 0x141   :  { %1026 = vmatpush3.bf16.msra.mxu1 %v1170_v55 }
 0x142   :  { %1027 = vmatprep.subr.bf16.mxu1 %v1171_v56 }
 0x145   :  { %1028 = vmatpush3.bf16.msra.mxu1 %v1172_v57 }
 0x146   :  { %1029 = vmatprep.subr.bf16.mxu1 %v1173_v58 }
 0x149   :  { %1030 = vmatpush3.bf16.msra.mxu1 %v1174_v59 }
 0x14a   :  { %1031 = vmatprep.subr.bf16.mxu1 %v1175_v60 }
 0x14d   :  { %1032 = vmatpush3.bf16.msra.mxu1 %v1176_v61 }
 0x203   :  { %v678_v63 = vpop.f32.mrb[0].mxu1 }
 0x204   :  { %v680_v0 = vpop.f32.mrb[1].mxu1  ;;  %v679_v5 = vadd.f32 %v678_v63, %v317_v2 }
 0x205   :  { %v682_v1 = vpop.f32.mrb[2].mxu1  ;;  %v681_v6 = vadd.f32 %v680_v0, %v321_v4 }
 0x206   :  { %v683_v3 = vpop.f32.mrb[3].mxu1 }
 0x20b   :  { %v719_v7 = vpop.f32.mrb[8].mxu0 }
 0x20c   :  { %v720_v8 = vadd.f32 %v719_v7, %v679_v5  ;;  %v721_v9 = vpop.f32.mrb[9].mxu0 }
 0x20d   :  { %v722_v10 = vadd.f32 %v721_v9, %v681_v6  ;;  %v723_v11 = vpop.f32.mrb[10].mxu0 }
 0x20e   :  { %v726_v12 = vmax.f32 %v720_v8, 0.0  ;;  %v724_v13 = vpop.f32.mrb[11].mxu0 }
 0x20f   :  { %v727_v14 = vmax.f32 %v722_v10, 0.0 }
 0x210   :  { %v728_v16 = vpack.c.bf16 %v726_v12, %v726_v12 }
 0x211   :  { %v729_v15 = vpack.c.bf16 %v727_v14, %v727_v14 }
 0x213   :  { %897 = vmatprep.mubr.bf16.mxu1 %v729_v15 }
 0x214   :  { %898 = vmatmul.mubr.bf16.vlgmr.msra.gmra.mrb[4].mxu1 %v728_v16 }
 0x2e7   :  { %v1033_v19 = vpop.f32.mrb[4].mxu1 }
 0x2e8   :  { %v1034_v18 = vpop.f32.mrb[5].mxu1 }
 0x2e9   :  { %v1035_v20 = vadd.f32 %v1034_v18, %v1033_v19  ;;  %v1036_v21 = vpop.f32.mrb[6].mxu1 }
 0x2ea   :  { %v1037_v22 = vpop.f32.mrb[7].mxu1 }
 0x2eb   :  { %v900_v23 = vadd.f32 %v1035_v20, %v1000_v17 }
 0x2ed   :  { %v905_v24 = vpack.c.bf16 %v900_v23, %v900_v23 }
 0x2ef   :  { %906 = vst [vmem:[#allocation10] sm:$0xf] %v905_v24 }
 0x2f0   :  { %1276 = shalt.err (!%p1273_p8)
}
 0x2f1   :  { %s1277_s6 = scalar_lea.hbm %s1443_s7, 64 }
 0x2f2   :  { %p1278_p9 = scmp.ne.s32.totalorder %s1443_s7, %s1277_s6  ;;  %p1281_p10 = scmp.lt.u32.totalorder %s1277_s6, %s1443_s7 }
 0x2f4   :  { %p1283_p11 = pnand %p1281_p10, %p1278_p9 }
 0x2f6   :  { %1286 = shalt.err (!%p1283_p11)
}
 0x2f7   :  { %916 = dma.vmem_to_hbm [thread:$0]  %s914_s9, 64, %s1443_s7, [#allocation4]  }
 0x2f8   :  { %1293 = dma.done.wait [#allocation4], 64  }
 0x2f9   :  { %1294 = vsyncadd [#allocation4], 4294967232 }
 0x2fa   :  { %920 = vsyncpa [#allocation3], 1 }
 0x2fb   :  { %921 = vsyncpa [#allocation6], 1 }
 0x2fc   :  { %922 = vsyncpa [#allocation9], 1 }
 0x2fd   :  { %923 = vsyncpa [#allocation4], 1 }

</bundles_post_ra>
